<compile_context>
chip_gen: v7x
topology: tpu7x:2x2x1
jax: 0.10.0
libtpu: 0.0.40
codegen_flags: <defaults>
</compile_context>

<pallas_src>
import functools

import jax
import jax.numpy as jnp
from jax.experimental import pallas as pl
from jax.experimental.pallas import tpu as pltpu

# Use exact f32 matmuls everywhere (kernel dots and the pure-JAX reference)
# so the correctness check is tight.
jax.config.update("jax_default_matmul_precision", "highest")


# ----------------------------------------------------------------------------
# Kernels
# ----------------------------------------------------------------------------
def _lrp_linear_kernel(a_ref, r_ref, wpt_ref, wp_ref, o_ref, *, eps):
    """Fused z^+-rule: out = a * ((r / (a @ relu(W).T + eps)) @ relu(W))."""
    a = a_ref[...].astype(jnp.float32)        # (tm, K)
    r = r_ref[...].astype(jnp.float32)        # (tm, N)
    z = jnp.dot(a, wpt_ref[...], preferred_element_type=jnp.float32) + eps   # (tm, N)
    s = r / z
    c = jnp.dot(s, wp_ref[...], preferred_element_type=jnp.float32)          # (tm, K)
    o_ref[...] = (a * c).astype(o_ref.dtype)


def _lrp_linear_scale_kernel(a_ref, r_ref, wpt_ref, wp_ref, wt_ref, b_ref, o_ref,
                             *, eps, use_z3):
    """Same as above plus the row-wise `scale_value` rescaling (scale=True)."""
    a = a_ref[...].astype(jnp.float32)        # (tm, K)
    r = r_ref[...].astype(jnp.float32)        # (tm, N)

    z = jnp.dot(a, wpt_ref[...], preferred_element_type=jnp.float32) + eps   # (tm, N)
    s = r / z
    c = jnp.dot(s, wp_ref[...], preferred_element_type=jnp.float32)          # (tm, K)
    out = a * c

    # z2 = a @ W.T + bias   (raw weights / bias)
    z2 = jnp.dot(a, wt_ref[...], preferred_element_type=jnp.float32) + b_ref[...]
    if use_z3:   # static: N not in {10, 1000}
        z3 = z2 * jnp.sign(jnp.maximum(z2, 0.0)) + eps
        d = r / z3 * z
    else:
        d = jnp.sign(jnp.maximum(r, 0.0)) * z2
    scale_value = (jnp.sum(d, axis=1, keepdims=True) /
                   jnp.sum(r, axis=1, keepdims=True))                        # (tm, 1)

    o_ref[...] = (out * scale_value).astype(o_ref.dtype)


# ----------------------------------------------------------------------------
# Wrapper
# ----------------------------------------------------------------------------
def relevance_propagation_linear(a, r, weight, bias=None, *,
                                 eps=1e-5, scale=False, block_m=256):
    """Pallas-backed equivalent of RelevancePropagationLinear.forward.

    a:      (B, K)  layer input activations (expected non-negative, post-ReLU)
    r:      (B, N)  incoming relevance
    weight: (N, K)  nn.Linear.weight
    bias:   (N,)    nn.Linear.bias (only needed when scale=True)
    """
    a = jnp.asarray(a, jnp.float32)
    r = jnp.asarray(r, jnp.float32)
    weight = jnp.asarray(weight, jnp.float32)

    # PyTorch module only defines the z+ path for non-negative activations;
    # otherwise it prints 'new arch' and returns r unchanged (shape differs, so
    # this must be a host-side decision).
    # TODO(synk): this data-dependent, shape-changing branch cannot live inside
    # a traced/jitted region.
    if bool(jnp.min(a) < 0):
        print("new arch")
        return r

    B, K = a.shape
    N = r.shape[1]
    assert weight.shape == (N, K), "weight must be (out_features, in_features)"

    wp = jnp.maximum(weight, 0.0)   # relu(W), (N, K)
    wpt = wp.T                      # (K, N) pre-transposed -> no in-kernel transpose

    # Batch tiling: small batches run as a single full-extent block; larger
    # batches are padded to a multiple of block_m and pipelined over the grid.
    if B <= block_m:
        tm, Bp = B, B
        a_p, r_p = a, r
    else:
        tm = block_m
        Bp = pl.cdiv(B, tm) * tm
        a_p = jnp.pad(a, ((0, Bp - B), (0, 0)))
        r_p = jnp.pad(r, ((0, Bp - B), (0, 0)))
    grid = (Bp // tm,)

    row_spec_k = pl.BlockSpec((tm, K), lambda i: (i, 0))   # a / out tiles
    row_spec_n = pl.BlockSpec((tm, N), lambda i: (i, 0))   # r tiles
    w_spec_kn = pl.BlockSpec((K, N), lambda i: (0, 0))     # relu(W).T (resident)
    w_spec_nk = pl.BlockSpec((N, K), lambda i: (0, 0))     # relu(W)   (resident)

    if not scale:
        kernel = functools.partial(_lrp_linear_kernel, eps=eps)
        in_specs = [row_spec_k, row_spec_n, w_spec_kn, w_spec_nk]
        args = (a_p, r_p, wpt, wp)
    else:
        assert bias is not None, "bias is required when scale=True"
        bias2 = jnp.asarray(bias, jnp.float32).reshape(1, N)
        wt = weight.T                                       # raw W.T, (K, N)
        use_z3 = (N != 1000) and (N != 10)
        kernel = functools.partial(_lrp_linear_scale_kernel, eps=eps, use_z3=use_z3)
        in_specs = [row_spec_k, row_spec_n, w_spec_kn, w_spec_nk,
                    pl.BlockSpec((K, N), lambda i: (0, 0)),
                    pl.BlockSpec((1, N), lambda i: (0, 0))]
        args = (a_p, r_p, wpt, wp, wt, bias2)

    out = pl.pallas_call(
        kernel,
        out_shape=jax.ShapeDtypeStruct((Bp, K), a.dtype),
        grid_spec=pl.GridSpec(
            grid=grid,
            in_specs=in_specs,
            out_specs=row_spec_k,
        ),
        compiler_params=pltpu.CompilerParams(
            dimension_semantics=("parallel",),   # batch tiles are independent
        ),
    )(*args)

    return out[:B]


# ----------------------------------------------------------------------------
# Pure-JAX reference (mirrors the PyTorch module)
# ----------------------------------------------------------------------------
def _reference_lrp_linear(a, r, weight, bias, *, eps, scale):
    wp = jnp.maximum(weight, 0.0)
    z = a @ wp.T + eps
    s = r / z
    c = s @ wp
    out = a * c
    if scale:
        z2 = a @ weight.T + bias[None, :]
        N = z2.shape[1]
        if N != 1000 and N != 10:
            z3 = z2 * jnp.sign(jnp.maximum(z2, 0.0)) + eps
            d = r / z3 * z
        else:
            d = jnp.sign(jnp.maximum(r, 0.0)) * z2
        sv = jnp.sum(d, axis=1) / jnp.sum(r, axis=1)
        out = out * sv[:, None]
    return out


if __name__ == "__main__":
    key = jax.random.PRNGKey(0)
    ka, kr, kw, kb = jax.random.split(key, 4)

    # Small shapes consistent with a linear LRP layer: batch=8, in=32, out=16.
    B, K, N = 8, 32, 16
    a = jax.random.uniform(ka, (B, K), dtype=jnp.float32)            # >= 0 (post-ReLU)
    r = jax.random.normal(kr, (B, N), dtype=jnp.float32)             # incoming relevance
    weight = jax.random.normal(kw, (N, K), dtype=jnp.float32) * 0.1  # nn.Linear.weight
    bias = jax.random.normal(kb, (N,), dtype=jnp.float32) * 0.1      # nn.Linear.bias

    eps = 1e-5

    # scale=False (default path)
    out = relevance_propagation_linear(a, r, weight, bias, eps=eps, scale=False)
    out = jax.block_until_ready(out)
    ref = _reference_lrp_linear(a, r, weight, bias, eps=eps, scale=False)
    assert out.shape == (B, K) and out.dtype == jnp.float32
    assert bool(jnp.allclose(out, ref, rtol=1e-3, atol=1e-4)), "scale=False mismatch"

    # scale=True path
    out_s = relevance_propagation_linear(a, r, weight, bias, eps=eps, scale=True)
    out_s = jax.block_until_ready(out_s)
    ref_s = _reference_lrp_linear(a, r, weight, bias, eps=eps, scale=True)
    assert out_s.shape == (B, K)
    assert bool(jnp.allclose(out_s, ref_s, rtol=1e-3, atol=1e-4)), "scale=True mismatch"

    print("KERNEL_OK")
</pallas_src>

<mosaic_0001>
module attributes {stable_mosaic.version = 11 : i64} {
  func.func @_lrp_linear_kernel(%arg0: i32, %arg1: memref<8x32xf32, #tpu.memory_space<vmem>>, %arg2: memref<8x16xf32, #tpu.memory_space<vmem>>, %arg3: memref<32x16xf32, #tpu.memory_space<vmem>>, %arg4: memref<16x32xf32, #tpu.memory_space<vmem>>, %arg5: memref<8x32xf32, #tpu.memory_space<vmem>>) attributes {dimension_semantics = [#tpu.dimension_semantics<parallel>], iteration_bounds = array<i64: 1>, scalar_prefetch = 0 : i64, scratch_operands = 0 : i64, tpu.core_type = #tpu.core_type<tc>, window_params = [{transform_indices = @transform_0, window_bounds = array<i64: 8, 32>}, {transform_indices = @transform_1, window_bounds = array<i64: 8, 16>}, {pipeline_mode = #tpu.pipeline_mode<synchronous>, transform_indices = @transform_2, window_bounds = array<i64: 32, 16>}, {pipeline_mode = #tpu.pipeline_mode<synchronous>, transform_indices = @transform_3, window_bounds = array<i64: 16, 32>}, {transform_indices = @transform_4, window_bounds = array<i64: 8, 32>}]} {
    %c0 = arith.constant 0 : index
    %c0_0 = arith.constant 0 : index
    %0 = vector.load %arg1[%c0, %c0_0] : memref<8x32xf32, #tpu.memory_space<vmem>>, vector<8x32xf32>
    %c0_1 = arith.constant 0 : index
    %c0_2 = arith.constant 0 : index
    %1 = vector.load %arg2[%c0_1, %c0_2] : memref<8x16xf32, #tpu.memory_space<vmem>>, vector<8x16xf32>
    %c0_3 = arith.constant 0 : index
    %c0_4 = arith.constant 0 : index
    %2 = vector.load %arg3[%c0_3, %c0_4] : memref<32x16xf32, #tpu.memory_space<vmem>>, vector<32x16xf32>
    %cst = arith.constant dense<0.000000e+00> : vector<8x16xf32>
    %3 = tpu.matmul %0, %2, %cst {dimension_numbers = #tpu.dot_dimension_numbers<[1], [0], [0], [1], [0, 0, 1, 1], [], []>, precision = #tpu.contract_precision<fp32>} : vector<8x32xf32>, vector<32x16xf32>, vector<8x16xf32> -> vector<8x16xf32>
    %cst_5 = arith.constant 9.99999974E-6 : f32
    %4 = vector.broadcast %cst_5 : f32 to vector<8x16xf32>
    %5 = arith.addf %3, %4 : vector<8x16xf32>
    %6 = arith.divf %1, %5 : vector<8x16xf32>
    %c0_6 = arith.constant 0 : index
    %c0_7 = arith.constant 0 : index
    %7 = vector.load %arg4[%c0_6, %c0_7] : memref<16x32xf32, #tpu.memory_space<vmem>>, vector<16x32xf32>
    %cst_8 = arith.constant dense<0.000000e+00> : vector<8x32xf32>
    %8 = tpu.matmul %6, %7, %cst_8 {dimension_numbers = #tpu.dot_dimension_numbers<[1], [0], [0], [1], [0, 0, 1, 1], [], []>, precision = #tpu.contract_precision<fp32>} : vector<8x16xf32>, vector<16x32xf32>, vector<8x32xf32> -> vector<8x32xf32>
    %9 = arith.mulf %0, %8 : vector<8x32xf32>
    %c0_9 = arith.constant 0 : index
    %c0_10 = arith.constant 0 : index
    %10 = vector.load %arg5[%c0_9, %c0_10] : memref<8x32xf32, #tpu.memory_space<vmem>>, vector<8x32xf32>
    tpu.vector_store %arg5[%c0_9, %c0_10], %9 {strides = array<i32>} : memref<8x32xf32, #tpu.memory_space<vmem>>, vector<8x32xf32>,
    return
  }
  func.func @transform_0(%arg0: i32) -> (i32, i32) {
    %c0_i32 = arith.constant 0 : i32
    %c0_i32_0 = arith.constant 0 : i32
    return %arg0, %c0_i32 : i32, i32
  }
  func.func @transform_1(%arg0: i32) -> (i32, i32) {
    %c0_i32 = arith.constant 0 : i32
    %c0_i32_0 = arith.constant 0 : i32
    return %arg0, %c0_i32 : i32, i32
  }
  func.func @transform_2(%arg0: i32) -> (i32, i32) {
    %c0_i32 = arith.constant 0 : i32
    %c0_i32_0 = arith.constant 0 : i32
    %c0_i32_1 = arith.constant 0 : i32
    return %c0_i32, %c0_i32_0 : i32, i32
  }
  func.func @transform_3(%arg0: i32) -> (i32, i32) {
    %c0_i32 = arith.constant 0 : i32
    %c0_i32_0 = arith.constant 0 : i32
    %c0_i32_1 = arith.constant 0 : i32
    return %c0_i32, %c0_i32_0 : i32, i32
  }
  func.func @transform_4(%arg0: i32) -> (i32, i32) {
    %c0_i32 = arith.constant 0 : i32
    %c0_i32_0 = arith.constant 0 : i32
    return %arg0, %c0_i32 : i32, i32
  }
}

</mosaic_0001>

<bundles_post_ra>
// kernel: tpu_custom_call.1
= control target key start
LH: loop header
LB: loop body
LE: loop exit
PB: predicated region body
PF: predicated region fallthrough
CT: control target
= control target key end

     0   :  { %v1256_v3 = vmov 0.0|0.0   ;;  %vm1257_vm0 = vmmov 0   ;;  %v1258_v8 = vmov 0.0   ;;  %vm24_vm1 = vcmask 261120   ;;  %s1369_s0 = inlined_call_operand.vmem [shape: f32[8,32], index: 0, kind: input, shape index: {}]   ;;  %s1370_s1 = inlined_call_operand.vmem [shape: f32[8,16], index: 1, kind: input, shape index: {}]   ;;  %s1371_s2 = inlined_call_operand.vmem [shape: f32[32,16], index: 2, kind: input, shape index: {}]   ;;  %s1372_s3 = inlined_call_operand.vmem [shape: f32[16,32], index: 3, kind: input, shape index: {}]   ;;  %s1373_s4 = inlined_call_operand.hbm [shape: f32[8,32], index: 4, kind: output, shape index: {}]  }
   0x1   :  { %v20_v0 = vld [vmem:[%s1371_s2] sm:$0xff]  ;;  %v21_v1 = vld [vmem:[%s1371_s2 + $0x8] sm:$0xff]  ;;  %v22_v2 = vld [vmem:[%s1371_s2 + $0x10] sm:$0xff]  ;;  %1158 = vmatprep.subr.bf16.mxu0 %v1256_v3  ;;  %1063 = vmatprep.mubr.msk.f32.mxu0 %vm1257_vm0, %v1258_v8 }
   0x2   :  { %v29_v4 = vand.u32 4294901760, %v20_v0  ;;  %v32_v5 = vand.u32 4294901760, %v21_v1  ;;  %v23_v6 = vld [vmem:[%s1371_s2 + $0x18] sm:$0xff]  ;;  %v35_v7 = vand.u32 4294901760, %v22_v2  ;;  %v1303_v9 = vld [vmem:[%s1369_s0] sm:$0xff]  ;;  %1152 = vmatprep.subr.bf16.mxu1 %v1256_v3  ;;  %1052 = vmatprep.mubr.msk.f32.mxu1 %vm1257_vm0, %v1258_v8 }
   0x3   :  { %v38_v10 = vand.u32 4294901760, %v23_v6  ;;  %v26_v11 = vsel %vm24_vm1, %v1303_v9, 0 }
   0x4   :  { %9 = vsyncpa [#allocation3], 0  ;;  %v109_v12 = vsub.f32 %v20_v0, %v29_v4  ;;  %v116_v13 = vsub.f32 %v21_v1, %v32_v5  ;;  %v123_v14 = vsub.f32 %v22_v2, %v35_v7  ;;  %v97_v16 = vand.u32 4294901760, %v26_v11  ;;  %v515_v41 = vld [vmem:[%s1372_s3] sm:$0xff]  ;;  %v516_v42 = vld [vmem:[%s1372_s3 + $0x8] sm:$0xff] }
   0x5   :  { %v130_v15 = vsub.f32 %v23_v6, %v38_v10  ;;  %v1153_v17 = vpack.c.bf16 %v32_v5, %v29_v4  ;;  %v1156_v27 = vpack.c.bf16 %v38_v10, %v35_v7  ;;  %v522_v43 = vand.u32 4294901760, %v515_v41  ;;  %v19_v63 = vld [vmem:[%s1370_s1] sm:$0xff]  ;;  %s1259_s1 = smov [#allocation2]  }
   0x6   :  { %v110_v18 = vand.u32 4294901760, %v109_v12  ;;  %v117_v19 = vand.u32 4294901760, %v116_v13  ;;  %v124_v20 = vand.u32 4294901760, %v123_v14  ;;  %v98_v22 = vsub.f32 %v26_v11, %v97_v16  ;;  %s988_s28 = sshll.u32 %s1259_s1, 4  ;;  %s989_s28 = int_to_ptr.vmem [resolvable:$true] %s988_s28 }
   0x7   :  { %v131_v21 = vand.u32 4294901760, %v130_v15  ;;  %1154 = vmatpush3.bf16.msra.mxu1 %v1153_v17  ;;  %v1165_v37 = vpack.c.bf16 %v116_v13, %v109_v12  ;;  %v1168_v38 = vpack.c.bf16 %v130_v15, %v123_v14  ;;  %v525_v44 = vand.u32 4294901760, %v516_v42  ;;  %s1232_s29 = scalar_lea.vmem %s989_s28, 128  ;;  %p1237_p1 = scmp.lt.s32.totalorder %s989_s28, %s989_s28 }
   0x8   :  { %v111_v23 = vsub.f32 %v109_v12, %v110_v18  ;;  %v118_v24 = vsub.f32 %v116_v13, %v117_v19  ;;  %v125_v25 = vsub.f32 %v123_v14, %v124_v20  ;;  %1155 = vmatprep.subr.bf16.mxu1 %v1256_v3  ;;  %v99_v28 = vand.u32 4294901760, %v98_v22  ;;  %p1233_p0 = scmp.ne.s32.totalorder %s989_s28, %s1232_s29  ;;  %p1238_p2 = scmp.lt.s32.totalorder %s1232_s29, %s1232_s29 }
   0x9   :  { %v132_v26 = vsub.f32 %v130_v15, %v131_v21  ;;  %v1177_v39 = vpack.c.bf16 %v117_v19, %v110_v18  ;;  %v1180_v40 = vpack.c.bf16 %v131_v21, %v124_v20  ;;  %v1189_v45 = vpack.c.bf16 %v525_v44, %v522_v43 }
   0xa   :  { %v112_v29 = vand.u32 4294901760, %v111_v23  ;;  %v119_v30 = vand.u32 4294901760, %v118_v24  ;;  %v126_v31 = vand.u32 4294901760, %v125_v25  ;;  %v100_v33 = vsub.f32 %v98_v22, %v99_v28  ;;  %p1239_p3 = por %p1238_p2, %p1237_p1 }
   0xb   :  { %v133_v32 = vand.u32 4294901760, %v132_v26  ;;  %1157 = vmatpush3.bf16.msra.mxu1 %v1156_v27  ;;  %v600_v46 = vsub.f32 %v515_v41, %v522_v43  ;;  %v607_v47 = vsub.f32 %v516_v42, %v525_v44  ;;  %vm517_vm2 = vcmask 130048  }
   0xc   :  { %v1159_v34 = vpack.c.bf16 %v119_v30, %v112_v29  ;;  %1188 = vmatprep.subr.bf16.mxu1 %v1256_v3  ;;  %v101_v35 = vand.u32 4294901760, %v100_v33  ;;  %p1240_p4 = pnand %p1239_p3, %p1233_p0 }
   0xd   :  { %v1162_v36 = vpack.c.bf16 %v133_v32, %v126_v31  ;;  %v601_v48 = vand.u32 4294901760, %v600_v46  ;;  %v608_v49 = vand.u32 4294901760, %v607_v47  ;;  %v1195_v55 = vpack.c.bf16 %v607_v47, %v600_v46 }
   0xe   :  { %1160 = vmatpush3.bf16.msra.mxu0 %v1159_v34  ;;  %1053 = vmatmul.mubr.f32.vlgmr.msra.gmra.mrb[0].mxu1 %v101_v35 }
   0xf   :  { %1161 = vmatprep.subr.bf16.mxu0 %v1256_v3  ;;  %1114 = vmatprep.mubr.msk.f32.mxu1 %vm1257_vm0, %v1258_v8  ;;  %v602_v50 = vsub.f32 %v600_v46, %v601_v48  ;;  %v609_v51 = vsub.f32 %v607_v47, %v608_v49  ;;  %v1201_v56 = vpack.c.bf16 %v608_v49, %v601_v48 }
  0x10   :  { %1190 = vmatpush3.bf16.msra.mxu1 %v1189_v45 }
  0x11   :  { %1191 = vmatprep.subr.bf16.mxu1 %v1256_v3  ;;  %v603_v52 = vand.u32 4294901760, %v602_v50  ;;  %v610_v53 = vand.u32 4294901760, %v609_v51 }
  0x12   :  { %1163 = vmatpush3.bf16.msra.mxu0 %v1162_v36 }
  0x13   :  { %1164 = vmatprep.subr.bf16.mxu0 %v1256_v3  ;;  %v1192_v54 = vpack.c.bf16 %v610_v53, %v603_v52 }
  0x15   :  { %1064 = vmatmul.mubr.f32.vlgmr.msra.gmra.mrb[0].mxu0 %v97_v16 }
  0x16   :  { %1166 = vmatpush3.bf16.msra.mxu0 %v1165_v37  ;;  %1074 = vmatprep.mubr.msk.f32.mxu0 %vm1257_vm0, %v1258_v8 }
  0x17   :  { %1167 = vmatprep.subr.bf16.mxu0 %v1256_v3 }
  0x1a   :  { %1169 = vmatpush3.bf16.msra.mxu0 %v1168_v38 }
  0x1b   :  { %1170 = vmatprep.subr.bf16.mxu0 %v1256_v3 }
  0x1d   :  { %1075 = vmatmul.mubr.f32.vlgmr.msra.gmra.mrb[0].mxu0 %v98_v22 }
  0x1e   :  { %1172 = vmatpush3.bf16.msra.mxu0 %v1153_v17  ;;  %1085 = vmatprep.mubr.msk.f32.mxu0 %vm1257_vm0, %v1258_v8 }
  0x1f   :  { %1173 = vmatprep.subr.bf16.mxu0 %v1256_v3 }
  0x22   :  { %1175 = vmatpush3.bf16.msra.mxu0 %v1156_v27 }
  0x23   :  { %1176 = vmatprep.subr.bf16.mxu0 %v1256_v3 }
  0x25   :  { %1086 = vmatmul.mubr.f32.vlgmr.msra.gmra.mrb[0].mxu0 %v99_v28 }
  0x26   :  { %1178 = vmatpush3.bf16.msra.mxu0 %v1177_v39  ;;  %1096 = vmatprep.mubr.msk.f32.mxu0 %vm1257_vm0, %v1258_v8 }
  0x27   :  { %1179 = vmatprep.subr.bf16.mxu0 %v1256_v3 }
  0x2a   :  { %1181 = vmatpush3.bf16.msra.mxu0 %v1180_v40 }
  0x2b   :  { %1182 = vmatprep.subr.bf16.mxu0 %v1256_v3 }
  0x2d   :  { %1097 = vmatmul.mubr.f32.vlgmr.msra.gmra.mrb[0].mxu0 %v97_v16 }
  0x2e   :  { %1184 = vmatpush3.bf16.msra.mxu0 %v1153_v17  ;;  %1107 = vmatprep.mubr.msk.f32.mxu0 %vm1257_vm0, %v1258_v8 }
  0x2f   :  { %1185 = vmatprep.subr.bf16.mxu0 %v1256_v3 }
  0x32   :  { %1187 = vmatpush3.bf16.msra.mxu0 %v1156_v27 }
  0x35   :  { %1108 = vmatmul.mubr.f32.vlgmr.msra.gmra.mrb[0].mxu0 %v97_v16 }
  0xe1   :  { %v103_v57 = vpop.f32.mrb[0].mxu1 }
  0xe2   :  { %v1054_v58 = vpop.f32.mrb[1].mxu1  ;;  %v104_v59 = vadd.f32 1e-05, %v103_v57 }
 0x108   :  { %v509_v60 = vpop.f32.mrb[0].mxu0 }
 0x109   :  { %v1207_v61 = vadd.f32 %v509_v60, %v104_v59  ;;  %v1109_v62 = vpop.f32.mrb[1].mxu0 }
 0x10b   :  { %1230 = vrcp.f32 %v1207_v61 }
 0x115   :  { %v1231_v0 = vpop.eup %1230 }
 0x116   :  { %v514_v1 = vmul.f32 %v1231_v0, %v19_v63 }
 0x118   :  { %v519_v2 = vsel %vm517_vm2, %v514_v1, 0 }
 0x119   :  { %v588_v4 = vand.u32 4294901760, %v519_v2 }
 0x11b   :  { %v589_v5 = vsub.f32 %v519_v2, %v588_v4 }
 0x11d   :  { %v590_v6 = vand.u32 4294901760, %v589_v5 }
 0x11f   :  { %v591_v7 = vsub.f32 %v589_v5, %v590_v6 }
 0x121   :  { %v592_v10 = vand.u32 4294901760, %v591_v7 }
 0x123   :  { %1115 = vmatmul.mubr.f32.vlgmr.msra.gmra.mrb[2].mxu1 %v592_v10 }
 0x124   :  { %1193 = vmatpush3.bf16.msra.mxu1 %v1192_v54  ;;  %1121 = vmatprep.mubr.msk.f32.mxu1 %vm1257_vm0, %v1258_v8 }
 0x125   :  { %1194 = vmatprep.subr.bf16.mxu1 %v1256_v3 }
 0x12b   :  { %1122 = vmatmul.mubr.f32.vlgmr.msra.gmra.mrb[2].mxu1 %v588_v4 }
 0x12c   :  { %1196 = vmatpush3.bf16.msra.mxu1 %v1195_v55  ;;  %1128 = vmatprep.mubr.msk.f32.mxu1 %vm1257_vm0, %v1258_v8 }
 0x12d   :  { %1197 = vmatprep.subr.bf16.mxu1 %v1256_v3 }
 0x133   :  { %1129 = vmatmul.mubr.f32.vlgmr.msra.gmra.mrb[2].mxu1 %v589_v5 }
 0x134   :  { %1199 = vmatpush3.bf16.msra.mxu1 %v1189_v45  ;;  %1135 = vmatprep.mubr.msk.f32.mxu1 %vm1257_vm0, %v1258_v8 }
 0x135   :  { %1200 = vmatprep.subr.bf16.mxu1 %v1256_v3 }
 0x13b   :  { %1136 = vmatmul.mubr.f32.vlgmr.msra.gmra.mrb[2].mxu1 %v590_v6 }
 0x13c   :  { %1202 = vmatpush3.bf16.msra.mxu1 %v1201_v56  ;;  %1142 = vmatprep.mubr.msk.f32.mxu1 %vm1257_vm0, %v1258_v8 }
 0x13d   :  { %1203 = vmatprep.subr.bf16.mxu1 %v1256_v3 }
 0x143   :  { %1143 = vmatmul.mubr.f32.vlgmr.msra.gmra.mrb[2].mxu1 %v588_v4 }
 0x144   :  { %1205 = vmatpush3.bf16.msra.mxu1 %v1189_v45  ;;  %1149 = vmatprep.mubr.msk.f32.mxu1 %vm1257_vm0, %v1258_v8 }
 0x14b   :  { %1150 = vmatmul.mubr.f32.vlgmr.msra.gmra.mrb[2].mxu1 %v588_v4 }
 0x21e   :  { %v976_v11 = vpop.f32.mrb[2].mxu1 }
 0x21f   :  { %v980_v12 = vmul.f32 %v976_v11, %v1303_v9  ;;  %v1151_v13 = vpop.f32.mrb[3].mxu1 }
 0x221   :  { %981 = vst.msk [vmem:[#allocation2] sm:$0xff] %vm24_vm1, %v980_v12 }
 0x222   :  { %1243 = shalt.err (!%p1240_p4)
}
 0x223   :  { %s1244_s6 = scalar_lea.hbm %s1373_s4, 128 }
 0x224   :  { %p1245_p5 = scmp.ne.s32.totalorder %s1373_s4, %s1244_s6  ;;  %p1248_p6 = scmp.lt.u32.totalorder %s1244_s6, %s1373_s4 }
 0x226   :  { %p1250_p7 = pnand %p1248_p6, %p1245_p5 }
 0x228   :  { %1253 = shalt.err (!%p1250_p7)
}
 0x229   :  { %991 = dma.vmem_to_hbm [thread:$0]  %s989_s28, 128, %s1373_s4, [#allocation3]  }
 0x22a   :  { %1254 = dma.done.wait [#allocation3], 128  }
 0x22b   :  { %1255 = vsyncadd [#allocation3], 4294967168 }
 0x22c   :  { %995 = vsyncpa [#allocation3], 1 }

</bundles_post_ra>
